<compile_context>
chip_gen: v6e
topology: v6e:2x2x1
jax: 0.10.0
libtpu: 0.0.40
codegen_flags: <defaults>
</compile_context>

<pallas_src>
import functools
import math

import jax
import jax.numpy as jnp
from jax.experimental import pallas as pl
from jax.experimental.pallas import tpu as pltpu

# bf16 rounding of -100000.0 (what torch's .to(torch.bfloat16) produces): -99840.0
_NEG_MASK_BF16 = float(jnp.bfloat16(-100000.0))


def _falcon_softmax_kernel(scores_ref, mask_ref, out_ref, mask_scr, *, inv_scale):
    # All refs are (tq, Sk); the leading (batch, head) dims are squeezed by the
    # BlockSpecs.  mask_ref is int8 0/1, mask_scr is f32 scratch.

    # Hoist the mask convert+scale out of the head loop: the head axis is the
    # innermost grid axis and the mask block index is constant across it, so
    # the scratch written at h == 0 is valid for the remaining H-1 heads.
    @pl.when(pl.program_id(2) == 0)
    def _():
        mask_scr[...] = mask_ref[...].astype(jnp.float32) * jnp.float32(_NEG_MASK_BF16)

    x = scores_ref[...].astype(jnp.float32) * jnp.float32(inv_scale)
    # F.softmax(..., dtype=bf16) casts its input to bf16 before the softmax;
    # keep the round-trip for semantic parity with the torch module.
    v = (x + mask_scr[...]).astype(jnp.bfloat16).astype(jnp.float32)
    v = v - jnp.max(v, axis=-1, keepdims=True)
    e = jnp.exp(v)
    denom = jnp.sum(e, axis=-1, keepdims=True)
    # approx reciprocal runs on the otherwise-idle EUP slot.
    out_ref[...] = (e * pl.reciprocal(denom, approx=True)).astype(jnp.bfloat16)


# Per-element VMEM footprint of one grid step:
#   double-buffered blocks (scores + int8 mask + bf16 out), the f32 mask
#   scratch, and ~4 live f32 intermediates Mosaic materialises (x, v, e, ...).
def _per_elem_vmem_bytes(scores_itemsize):
    return 2 * (scores_itemsize + 1 + 2) + 4 + 16


def _choose_tq(Sq, Sk, scores_itemsize, batch=1,
               block_budget_bytes=6 * 1024 * 1024, min_parallel=8):
    """Largest row tile that (a) divides Sq, (b) keeps the full per-step VMEM
    footprint (blocks + scratch + f32 temporaries) under the byte budget,
    (c) leaves at least ~min_parallel parallel grid steps for megacore
    sharding on small batches, and (d) is a multiple of 32 (then 16, then 8)
    or the full Sq."""
    bytes_per_row = Sk * _per_elem_vmem_bytes(scores_itemsize)
    cap = min(Sq, max(8, block_budget_bytes // max(1, bytes_per_row)), 1024)
    if batch < min_parallel:
        # Keep B * (Sq // tq) reasonably large so a 2-TC chip (v7x) doesn't idle.
        cap = min(cap, max(32, (Sq * batch) // min_parallel))
    if cap >= Sq:
        return Sq
    for mult in (32, 16, 8):
        start = cap - (cap % mult)
        for tq in range(start, 0, -mult):
            if Sq % tq == 0:
                return tq
    return Sq  # Sq has no multiple-of-8 divisor <= cap -> whole-row blocks


def _vmem_limit_bytes(per_step_block_bytes):
    """Explicit scoped-VMEM limit: enough headroom for the pipelined blocks,
    clamped to ~90% of the chip's physical VMEM (64 MiB on v7x)."""
    requested = max(32 << 20, int(3 * per_step_block_bytes))
    try:
        cap = pltpu.get_tpu_info().vmem_capacity_bytes
    except Exception:
        cap = 64 << 20
    return int(min(requested, int(cap * 0.9)))


def falcon_softmax(attention_scores, attention_mask, head_dim=64, tq=None):
    """attention_scores: [B, H, Sq, Sk] (bf16 or f32)
       attention_mask  : [B, 1, Sq, Sk] bool / int8 (broadcast across heads)
       returns bf16 [B, H, Sq, Sk]."""
    B, H, Sq, Sk = attention_scores.shape
    assert attention_mask.shape == (B, 1, Sq, Sk)
    inv_scale = 1.0 / math.sqrt(head_dim)

    # Carry the mask as int8 (quarter of f32 HBM traffic). Skip the convert
    # pass entirely if the caller already provides an int8/uint8 mask.
    if attention_mask.dtype in (jnp.int8, jnp.uint8):
        mask_i8 = attention_mask
    else:
        mask_i8 = attention_mask.astype(jnp.int8)

    scores_itemsize = jnp.dtype(attention_scores.dtype).itemsize
    if tq is None:
        tq = _choose_tq(Sq, Sk, scores_itemsize, batch=B)
    assert Sq % tq == 0, f"row tile {tq} must divide Sq={Sq}"
    # NOTE: best store perf when Sk is a multiple of 128 (real Falcon is);
    # non-multiples still work since the block spans the full key axis.

    per_step_bytes = tq * Sk * _per_elem_vmem_bytes(scores_itemsize)

    # Heads innermost: mask block index is constant across h, so its DMA is
    # issued once per (b, j) and skipped (and its convert+scale is hoisted
    # into scratch) for the remaining H-1 iterations.
    grid = (B, Sq // tq, H)

    out = pl.pallas_call(
        functools.partial(_falcon_softmax_kernel, inv_scale=inv_scale),
        out_shape=jax.ShapeDtypeStruct((B, H, Sq, Sk), jnp.bfloat16),
        grid_spec=pltpu.PrefetchScalarGridSpec(
            num_scalar_prefetch=0,
            grid=grid,
            in_specs=[
                pl.BlockSpec((None, None, tq, Sk), lambda b, j, h: (b, h, j, 0)),
                pl.BlockSpec((None, None, tq, Sk), lambda b, j, h: (b, 0, j, 0)),
            ],
            out_specs=pl.BlockSpec((None, None, tq, Sk), lambda b, j, h: (b, h, j, 0)),
            scratch_shapes=[pltpu.VMEM((tq, Sk), jnp.float32)],
        ),
        compiler_params=pltpu.CompilerParams(
            dimension_semantics=("parallel", "parallel", "arbitrary"),
            vmem_limit_bytes=_vmem_limit_bytes(per_step_bytes),
        ),
    )(attention_scores, mask_i8)

    return out


def _reference(attention_scores, attention_mask, head_dim=64):
    scale = math.sqrt(head_dim)
    mask_f = jnp.where(
        attention_mask, jnp.bfloat16(-100000.0), jnp.bfloat16(0.0)
    ).astype(jnp.bfloat16)
    x = (attention_scores / jnp.asarray(scale, attention_scores.dtype)).astype(
        jnp.float32
    )
    v = (x + mask_f.astype(jnp.float32)).astype(jnp.bfloat16).astype(jnp.float32)
    v = v - jnp.max(v, axis=-1, keepdims=True)
    e = jnp.exp(v)
    return (e / jnp.sum(e, axis=-1, keepdims=True)).astype(jnp.bfloat16)


def _check_case(key, B, H, Sq, Sk, head_dim, tq=None):
    k1, _ = jax.random.split(key)
    # Native Falcon activation dtype is bf16 -> exercise the bf16 input path.
    attention_scores = jax.random.normal(k1, (B, H, Sq, Sk), dtype=jnp.bfloat16)
    causal = jnp.triu(jnp.ones((Sq, Sk), dtype=bool), k=1)
    attention_mask = jnp.broadcast_to(causal, (B, 1, Sq, Sk))

    out = falcon_softmax(attention_scores, attention_mask, head_dim=head_dim, tq=tq)
    out = jax.block_until_ready(out)

    ref = _reference(attention_scores, attention_mask, head_dim=head_dim)
    assert out.shape == (B, H, Sq, Sk)
    assert out.dtype == jnp.bfloat16
    max_err = jnp.max(jnp.abs(out.astype(jnp.float32) - ref.astype(jnp.float32)))
    assert float(max_err) < 2e-2, f"max err {max_err} for shape {(B, H, Sq, Sk)}"


if __name__ == "__main__":
    key = jax.random.PRNGKey(0)
    k1, k2, k3 = jax.random.split(key, 3)

    # Small shape consistent with the test module (whole-row tile path).
    _check_case(k1, B=2, H=4, Sq=16, Sk=128, head_dim=64)
    # Tiled path + mask scratch reuse across heads (explicit tq).
    _check_case(k2, B=1, H=3, Sq=64, Sk=128, head_dim=64, tq=32)
    # Auto-chosen tq path (exercises the megacore-aware cap + 32-mult search).
    _check_case(k3, B=1, H=2, Sq=128, Sk=256, head_dim=64)

    print("KERNEL_OK")
</pallas_src>

<mosaic_0001>
module attributes {stable_mosaic.version = 11 : i64} {
  func.func @_falcon_softmax_kernel(%arg0: i32, %arg1: i32, %arg2: i32, %arg3: memref<1x1x16x128xbf16, #tpu.memory_space<vmem>>, %arg4: memref<1x1x16x128xi8, #tpu.memory_space<vmem>>, %arg5: memref<1x1x16x128xbf16, #tpu.memory_space<vmem>>, %arg6: memref<16x128xf32, #tpu.memory_space<vmem>>) attributes {dimension_semantics = [#tpu.dimension_semantics<parallel>, #tpu.dimension_semantics<parallel>, #tpu.dimension_semantics<arbitrary>], iteration_bounds = array<i64: 2, 1, 4>, scalar_prefetch = 0 : i64, scratch_operands = 1 : i64, tpu.core_type = #tpu.core_type<tc>, window_params = [{transform_indices = @transform_0, window_bounds = array<i64: 1, 1, 16, 128>}, {transform_indices = @transform_1, window_bounds = array<i64: 1, 1, 16, 128>}, {transform_indices = @transform_2, window_bounds = array<i64: 1, 1, 16, 128>}]} {
    %c0_i32 = arith.constant 0 : i32
    %0 = arith.cmpi eq, %arg2, %c0_i32 : i32
    %1 = arith.extui %0 : i1 to i32
    %c0_i32_0 = arith.constant 0 : i32
    %2 = arith.cmpi ne, %1, %c0_i32_0 : i32
    scf.if %2 {
      %c0_12 = arith.constant 0 : index
      %c0_13 = arith.constant 0 : index
      %c0_14 = arith.constant 0 : index
      %c0_15 = arith.constant 0 : index
      %26 = vector.load %arg4[%c0_12, %c0_13, %c0_14, %c0_15] : memref<1x1x16x128xi8, #tpu.memory_space<vmem>>, vector<1x1x16x128xi8>
      %27 = vector.shape_cast %26 : vector<1x1x16x128xi8> to vector<16x128xi8>
      %28 = arith.sitofp %27 : vector<16x128xi8> to vector<16x128xf32>
      %cst_16 = arith.constant -9.984000e+04 : f32
      %29 = vector.broadcast %cst_16 : f32 to vector<16x128xf32>
      %30 = arith.mulf %28, %29 : vector<16x128xf32>
      %c0_17 = arith.constant 0 : index
      %c0_18 = arith.constant 0 : index
      %31 = vector.load %arg6[%c0_17, %c0_18] : memref<16x128xf32, #tpu.memory_space<vmem>>, vector<16x128xf32>
      tpu.vector_store %arg6[%c0_17, %c0_18], %30 {strides = array<i32>} : memref<16x128xf32, #tpu.memory_space<vmem>>, vector<16x128xf32>,
    } else {
    }
    %c0 = arith.constant 0 : index
    %c0_1 = arith.constant 0 : index
    %c0_2 = arith.constant 0 : index
    %c0_3 = arith.constant 0 : index
    %3 = vector.load %arg3[%c0, %c0_1, %c0_2, %c0_3] : memref<1x1x16x128xbf16, #tpu.memory_space<vmem>>, vector<1x1x16x128xbf16>
    %4 = vector.shape_cast %3 : vector<1x1x16x128xbf16> to vector<16x128xbf16>
    %5 = arith.extf %4 : vector<16x128xbf16> to vector<16x128xf32>
    %cst = arith.constant 1.250000e-01 : f32
    %6 = vector.broadcast %cst : f32 to vector<16x128xf32>
    %7 = arith.mulf %5, %6 : vector<16x128xf32>
    %c0_4 = arith.constant 0 : index
    %c0_5 = arith.constant 0 : index
    %8 = vector.load %arg6[%c0_4, %c0_5] : memref<16x128xf32, #tpu.memory_space<vmem>>, vector<16x128xf32>
    %9 = arith.addf %7, %8 : vector<16x128xf32>
    %10 = arith.truncf %9 : vector<16x128xf32> to vector<16x128xbf16>
    %11 = arith.extf %10 : vector<16x128xbf16> to vector<16x128xf32>
    %cst_6 = arith.constant dense<0xFF800000> : vector<16xf32>
    %12 = vector.multi_reduction <maximumf>, %11, %cst_6 [1] : vector<16x128xf32> to vector<16xf32>
    %13 = vector.shape_cast %12 : vector<16xf32> to vector<16x1xf32>
    %14 = vector.broadcast %13 : vector<16x1xf32> to vector<16x128xf32>
    %15 = arith.subf %11, %14 : vector<16x128xf32>
    %16 = math.exp %15 : vector<16x128xf32>
    %cst_7 = arith.constant dense<0.000000e+00> : vector<16xf32>
    %17 = vector.multi_reduction <add>, %16, %cst_7 [1] : vector<16x128xf32> to vector<16xf32>
    %18 = vector.shape_cast %17 : vector<16xf32> to vector<16x1xf32>
    %19 = tpu.reciprocal %18 {approx = true} : vector<16x1xf32> -> vector<16x1xf32>
    %20 = vector.broadcast %19 : vector<16x1xf32> to vector<16x128xf32>
    %21 = arith.mulf %16, %20 : vector<16x128xf32>
    %22 = arith.truncf %21 : vector<16x128xf32> to vector<16x128xbf16>
    %c0_8 = arith.constant 0 : index
    %c0_9 = arith.constant 0 : index
    %c0_10 = arith.constant 0 : index
    %c0_11 = arith.constant 0 : index
    %23 = vector.load %arg5[%c0_8, %c0_9, %c0_10, %c0_11] : memref<1x1x16x128xbf16, #tpu.memory_space<vmem>>, vector<1x1x16x128xbf16>
    %24 = vector.shape_cast %23 : vector<1x1x16x128xbf16> to vector<16x128xbf16>
    %25 = vector.shape_cast %22 : vector<16x128xbf16> to vector<1x1x16x128xbf16>
    tpu.vector_store %arg5[%c0_8, %c0_9, %c0_10, %c0_11], %25 {strides = array<i32>} : memref<1x1x16x128xbf16, #tpu.memory_space<vmem>>, vector<1x1x16x128xbf16>,
    return
  }
  func.func @transform_0(%arg0: i32, %arg1: i32, %arg2: i32) -> (i32, i32, i32, i32) {
    %c0_i32 = arith.constant 0 : i32
    %c0_i32_0 = arith.constant 0 : i32
    return %arg0, %arg2, %arg1, %c0_i32 : i32, i32, i32, i32
  }
  func.func @transform_1(%arg0: i32, %arg1: i32, %arg2: i32) -> (i32, i32, i32, i32) {
    %c0_i32 = arith.constant 0 : i32
    %c0_i32_0 = arith.constant 0 : i32
    %c0_i32_1 = arith.constant 0 : i32
    return %arg0, %c0_i32, %arg1, %c0_i32_0 : i32, i32, i32, i32
  }
  func.func @transform_2(%arg0: i32, %arg1: i32, %arg2: i32) -> (i32, i32, i32, i32) {
    %c0_i32 = arith.constant 0 : i32
    %c0_i32_0 = arith.constant 0 : i32
    return %arg0, %arg2, %arg1, %c0_i32 : i32, i32, i32, i32
  }
}

</mosaic_0001>

<bundles_post_ra>
// kernel: tpu_custom_call.1
= control target key start
LH: loop header
LB: loop body
LE: loop exit
PB: predicated region body
PF: predicated region fallthrough
CT: control target
= control target key end

     0   :  { %s1058_s0 = inlined_call_operand.hbm [shape: bf16[2,4,16,128], index: 0, kind: input, shape index: {}]   ;;  %s1059_s1 = inlined_call_operand.hbm [shape: s8[2,1,16,128], index: 1, kind: input, shape index: {}]   ;;  %s1060_s2 = inlined_call_operand.hbm [shape: bf16[2,4,16,128], index: 2, kind: output, shape index: {}]  }
   0x1   :  { %1067 = sst [smem:[#allocation16_spill]] %s1060_s2 }
   0x2   :  { %7 = vsyncpa [#allocation4], 0 }
   0x3   :  { %9 = vsyncpa [#allocation4 + $0x1], 0 }
   0x4   :  { %10 = vsyncpa [#allocation7], 0 }
   0x5   :  { %12 = vsyncpa [#allocation7 + $0x1], 0 }
   0x6   :  { %13 = vsyncpa [#allocation5], 0 }
   0x7   :  { %15 = vsyncpa [#allocation5 + $0x1], 0  ;;  %s803_s9 = smov 0   ;;  %s805_s10 = smov 0  }
   0x8   :  { %s807_s11 = smov 0   ;;  %s809_s12 = smov 0  }
   0x9   :  { %s811_s13 = smov 0   ;;  %s813_s14 = smov 0  }
   0xa   :  { %s815_s15 = smov 0   ;;  %s817_s16 = smov 0  }
   0xb   :  { %s819_s17 = smov 0   ;;  %s821_s18 = smov 0  }
   0xc   :  { %s823_s19 = smov 0  }
   0xd LB: > { %1068 = sst [smem:[#allocation12_spill]] %s749_s12  ;;  %s436_s20 = sadd.s32 4294967295, %s777_s19   ;;  %s777_s19 = sphi %s823_s19, %s21_s19   ;;  %s773_s18 = sphi %s821_s18, %s1098_s18   ;;  %s769_s17 = sphi %s819_s17, %s1097_s17   ;;  %s765_s16 = sphi %s817_s16, %s1096_s16   ;;  %s761_s15 = sphi %s815_s15, %s1095_s15   ;;  %s757_s14 = sphi %s813_s14, %s1094_s14   ;;  %s753_s13 = sphi %s811_s13, %s1093_s13   ;;  %s749_s12 = sphi %s809_s12, %s1092_s12   ;;  %s745_s11 = sphi %s807_s11, %s1091_s11   ;;  %s741_s10 = sphi %s805_s10, %s1090_s10   ;;  %s737_s9 = sphi %s803_s9, %s1089_s9  }
   0xe   : > { %s437_s21 = sadd.s32 4294967294, %s777_s19   ;;  %s33_s22 = sadd.s32 1, %s769_s17 }
   0xf   : > { %s40_s23 = sadd.s32 1, %s773_s18  ;;  %p34_p0 = scmp.ge.s32.totalorder %s33_s22, 4 }
  0x10   : > { %s51_s24 = sadd.s32 1, %s757_s14  ;;  %p58_p1 = scmp.ne.s32.totalorder %s757_s14, %s753_s13 }
  0x11   : > { %p1066_p2 = scmp.eq.s32.totalorder %s777_s19, 0  ;;  %s1100_s22 = smov (%p34_p0, %s33_s22), 0 }
  0x12   : > { %1069 = sst [smem:[#allocation13_spill]] %s1100_s22  ;;  %s1102_s23 = smov (!%p34_p0, %s40_s23), %s773_s18 }
  0x13   : > { %s45_s25 = ssub.s32 %s769_s17, %s1100_s22  ;;  %p873_p3 = por %p1066_p2, %p58_p1 }
  0x14   : > { %p42_p4 = scmp.ge.s32.totalorder %s1102_s23, 2  ;;  %p64_p5 = scmp.ne.s32.totalorder %s753_s13, %s749_s12 }
  0x15   : > { %p879_p6 = scmp.eq.s32.totalorder %s436_s20, 0  ;;  %p120_p7 = scmp.eq.s32.totalorder %s436_s20, 7 }
  0x16   : > { %s1104_s23 = smov (%p42_p4, %s1102_s23), 0  ;;  %p126_p10 = scmp.eq.s32.totalorder %s437_s21, 7 }
  0x17   : > { %1072 = sst [smem:[#allocation14_spill]] %s1104_s23  ;;  %p887_p8 = por %p879_p6, %p64_p5 }
  0x18   : > { %p891_p9 = por %p120_p7, %p58_p1  ;;  %s897_s30 = ssub.s32 %s773_s18, %s1104_s23 }
  0x19   : > { %s46_s3 = sor.u32 %s45_s25, %s897_s30  ;;  %p901_p13 = por %p126_p10, %p64_p5 }
  0x1a   : > { %p49_p12 = scmp.eq.s32.totalorder %s46_s3, 0  ;;  %p493_p0 = scmp.lt.s32.totalorder %s777_s19, 8 }
  0x1b   : > { %s1075_s4 = scalar_select %p901_p13, 1, 0 }
  0x1c   : > { %s907_s5 = scalar_select %p49_p12, %s757_s14, %s51_s24  }
  0x1d   : > { %1076 = sst [smem:[#allocation15_spill]] %s1075_s4  ;;  %s146_s6 = sand.u32 1, %s757_s14  }
  0x1e   : > { %s441_s7 = sshll.u32 %s769_s17, 1  ;;  %s440_s8 = sshll.u32 %s146_s6, 3 }
  0x1f   : > { %s442_s20 = sshll.u32 %s773_s18, 3  ;;  %s150_s22 = scalar_lea.vmem [#allocation3], %s440_s8 }
  0x20   : > { %s158_s23 = sadd.s32 %s442_s20, %s441_s7  ;;  %s161_s21 = sshll.u32 %s150_s22, 4  ;;  %s162_s21 = int_to_ptr.vmem [resolvable:$true] %s161_s21 }
  0x21   : > { %s443_s25 = sshll.u32 %s158_s23, 6  ;;  %p919_p1 = pnand %p493_p0, %p873_p3 }
  0x22   : > { %s160_s3 = scalar_lea.hbm %s1058_s0, %s443_s25  ;;  %p447_p4 = scmp.ge.s32.totalorder %s777_s19, 1 }
  0x23   : > { %s147_s24 = scalar_lea.sflag [#allocation4], %s146_s6  ;;  %p599_p5 = pneg %p919_p1 }
  0x24   : > { %s610_s7 = scalar_lea.vmem %s162_s21, 128  ;;  %s779_s22 = smov [#allocation3]  }
  0x25   : > { %p611_p7 = scmp.ne.s32.totalorder %s162_s21, %s610_s7  ;;  %s615_s23 = sshll.u32 %s779_s22, 4  ;;  %s616_s23 = int_to_ptr.vmem [resolvable:$false] %s615_s23 }
  0x26   : > { %s617_s2 = scalar_lea.vmem %s616_s23, 256  ;;  %p618_p2 = scmp.lt.s32.totalorder %s162_s21, %s616_s23 }
  0x27   : > { %p613_p10 = pnand %p611_p7, %p599_p5  ;;  %p619_p11 = scmp.lt.s32.totalorder %s617_s2, %s610_s7 }
  0x29   : > { %p614_p12 = pneg %p613_p10  ;;  %p620_p13 = por %p619_p11, %p618_p2 }
  0x2b   : > { %p621_p3 = pnand %p620_p13, %p614_p12 }
  0x2d   : > { %624 = shalt.err (!%p621_p3)
}
  0x2e   : > { %s780_s12 = smov 64   ;;  %s781_s26 = smov 4  }
  0x2f   : > { %485 = dma.hbm_to_vmem [thread:$0]  (!%p919_p1), %s160_s3, 128, %s162_s21, %s147_s24, %s780_s12, %s780_s12, %s781_s26  }
  0x30   : > { %p192_p2 = scmp.lt.s32.totalorder %s777_s19, 9  ;;  %s79_s8 = sadd.s32 1, %s745_s11 }
  0x31   : > { %p86_p13 = scmp.ne.s32.totalorder %s745_s11, %s741_s10  ;;  %p1079_p5 = scmp.eq.s32.totalorder %s897_s30, 0 }
  0x32   : > { %p931_p11 = pnand %p447_p4, %p192_p2  ;;  %p1080_p7 = scmp.eq.s32.totalorder %s777_s19, 0 }
  0x33   : > { %s941_s20 = scalar_select %p1079_p5, %s745_s11, %s79_s8  }
  0x34   : > { %p88_p10 = por %p86_p13, %p1080_p7  ;;  %p92_p12 = scmp.ne.s32.totalorder %s741_s10, %s737_s9 }
  0x35   : > { %s171_s25 = sand.u32 1, %s745_s11   ;;  %s460_s7 = sshll.u32 %s773_s18, 6 }
  0x36   : > { %p951_p3 = por %p92_p12, %p879_p6  ;;  %s444_s21 = sshll.u32 %s171_s25, 2 }
  0x37   : > { %s183_s22 = scalar_lea.hbm %s1059_s1, %s460_s7  ;;  %p960_p1 = pnand %p493_p0, %p88_p10 }
  0x38   : > { %s175_s23 = scalar_lea.vmem [#allocation6], %s444_s21  ;;  %s172_s2 = scalar_lea.sflag [#allocation7], %s171_s25 }
  0x39   : > { %s184_s9 = sshll.u32 %s175_s23, 4  ;;  %p627_p6 = pneg %p960_p1  ;;  %s185_s9 = int_to_ptr.vmem [resolvable:$true] %s184_s9 }
  0x3a   : > { %s638_s27 = scalar_lea.vmem %s185_s9, 64  ;;  %s782_s12 = smov [#allocation6]  }
  0x3b   : > { %p639_p4 = scmp.ne.s32.totalorder %s185_s9, %s638_s27  ;;  %s643_s26 = sshll.u32 %s782_s12, 4  ;;  %s644_s26 = int_to_ptr.vmem [resolvable:$false] %s643_s26 }
  0x3c   : > { %s645_s8 = scalar_lea.vmem %s644_s26, 128  ;;  %p646_p5 = scmp.lt.s32.totalorder %s185_s9, %s644_s26 }
  0x3d   : > { %p641_p2 = pnand %p639_p4, %p627_p6  ;;  %p647_p0 = scmp.lt.s32.totalorder %s645_s8, %s638_s27 }
  0x3f   : > { %p642_p13 = pneg %p641_p2  ;;  %p648_p7 = por %p647_p0, %p646_p5 }
  0x41   : > { %p649_p10 = pnand %p648_p7, %p642_p13 }
  0x43   : > { %652 = shalt.err (!%p649_p10)
}
  0x44   : > { %s783_s7 = smov 32   ;;  %s784_s21 = smov 2  }
  0x45   : > { %488 = dma.hbm_to_vmem [thread:$0]  (!%p960_p1), %s183_s22, 64, %s185_s9, %s172_s2, %s783_s7, %s783_s7, %s784_s21  }
  0x46   : > { %196 = sbr.rel (%p931_p11) target bundleno = 438 (0x1b6), region = 28  ;;  %s971_s25 = sand.u32 (!%p931_p11), 1, %s753_s13  }
  0x47   : > { %s448_s3 = sshll.u32 (!%p931_p11), %s971_s25, 3  ;;  %s199_s24 = scalar_lea.sflag (!%p931_p11), [#allocation4], %s971_s25 }
  0x48   : > { %s202_s23 = scalar_lea.vmem (!%p931_p11), [#allocation3], %s448_s3 }
  0x4b   : > { %724 = dma.done.wait (%p887_p8), %s199_s24, 128  }
  0x4c   : > { %726 = vsyncadd (%p887_p8), %s199_s24, 4294967168  ;;  %s207_s22 = sand.u32 1, %s741_s10  }
  0x4d   : > { %s449_s30 = sshll.u32 %s207_s22, 2  ;;  %s208_s6 = scalar_lea.sflag [#allocation7], %s207_s22 }
  0x4e   : > { %s211_s9 = scalar_lea.vmem [#allocation6], %s449_s30 }
  0x4f   : > { %728 = dma.done.wait (%p951_p3), %s208_s6, 64  }
  0x50   : > { %730 = vsyncadd (%p951_p3), %s208_s6, 4294967232  ;;  %s984_s2 = scalar_lea.vmem [#allocation8], %s448_s3  ;;  %p451_p11 = scmp.ne.s32.totalorder %s761_s15, 0 }
  0x52   : > { %243 = sbr.rel (%p451_p11) target bundleno = 95 (0x5f), region = 40 }
  0x57   : > { %v473_v0 = vld [vmem:[%s211_s9] sm:$0xf]  }
  0x58   : > { %v474_v1 = vunpack.c.0.s8 %v473_v0  ;;  %v475_v2 = vunpack.c.1.s8 %v473_v0 }
  0x5a   : > { %v248_v3 = vcvt.s32.f32 %v474_v1  ;;  %v249_v4 = vcvt.s32.f32 %v475_v2 }
  0x5c   : > { %v250_v5 = vmul.f32 -99840.0, %v248_v3  ;;  %v251_v6 = vmul.f32 -99840.0, %v249_v4 }
  0x5e   : > { %252 = vst [vmem:[#allocation2] sm:$0xff] %v250_v5  ;;  %253 = vst [vmem:[#allocation2 + $0x8] sm:$0xff] %v251_v6 }
  0x5f PF: > { %v464_v7 = vld [vmem:[%s202_s23] sm:$0xff]   ;;  %s455_s28 = sshll.u32 %s761_s15, 1  ;;  %s456_s4 = sshll.u32 %s765_s16, 3 }
  0x60   : > { %v465_v8 = vunpack.c.l.bf16 %v464_v7  ;;  %v466_v9 = vunpack.c.h.bf16 %v464_v7  ;;  %s310_s27 = sadd.s32 %s456_s4, %s455_s28  ;;  %s313_s26 = sshll.u32 %s984_s2, 4  ;;  %s995_s26 = int_to_ptr.vmem [resolvable:$true] %s313_s26 }
  0x61   : > { %s457_s12 = sshll.u32 %s310_s27, 6  ;;  %s1083_s21 = sld [smem:[#allocation16_spill]] }
  0x62   : > { %v258_v12 = vmul.f32 0.125, %v465_v8  ;;  %v259_v13 = vmul.f32 0.125, %v466_v9  ;;  %s296_s15 = scalar_lea.sflag [#allocation5], %s971_s25  ;;  %s653_s16 = scalar_lea.vmem %s995_s26, 128 }
  0x63   : > { %p654_p8 = scmp.ne.s32.totalorder %s995_s26, %s653_s16  ;;  %s785_s24 = smov [#allocation8]  }
  0x64   : > { %s657_s23 = sshll.u32 %s785_s24, 4  ;;  %s658_s23 = int_to_ptr.vmem [resolvable:$false] %s657_s23 }
  0x65   : > { %v260_v10 = vld [vmem:[#allocation2] sm:$0xff]  ;;  %v261_v11 = vld [vmem:[#allocation2 + $0x8] sm:$0xff]  ;;  %p655_p12 = pnand %p654_p8, %p891_p9  ;;  %s659_s22 = scalar_lea.vmem %s658_s23, 256 }
  0x66   : > { %v262_v14 = vadd.f32 %v260_v10, %v258_v12  ;;  %v263_v15 = vadd.f32 %v261_v11, %v259_v13  ;;  %p660_p1 = scmp.lt.s32.totalorder %s995_s26, %s658_s23  ;;  %p661_p6 = scmp.lt.s32.totalorder %s659_s22, %s653_s16 }
  0x67   : > { %s993_s3 = scalar_lea.hbm %s1083_s21, %s457_s12  ;;  %p656_p3 = pneg %p655_p12 }
  0x68   : > { %v264_v16 = vpack.c.bf16 %v263_v15, %v262_v14  ;;  %p662_p4 = por %p661_p6, %p660_p1 }
  0x6a   : > { %v265_v17 = vunpack.c.l.bf16 %v264_v16  ;;  %v266_v18 = vunpack.c.h.bf16 %v264_v16  ;;  %p663_p2 = pnand %p662_p4, %p656_p3 }
  0x6c   : > { %267 = vmax.xlane.f32.xlu0 %v265_v17 }
  0x70   : > { %269 = vmax.xlane.f32.xlu0 %v266_v18 }
  0xf5   : > { %v268_v19 = vpop.xlane.xlu0 %267 }
  0xf6   : > { %v271_v20 = vsub.f32 %v265_v17, %v268_v19 }
  0xf8   : > { %v273_v21 = vmul.f32 1.442695, %v271_v20 }
  0xf9   : > { %v270_v22 = vpop.xlane.xlu0 %269 }
  0xfa   : > { %589 = vpow2.f32 %v273_v21  ;;  %v272_v23 = vsub.f32 %v266_v18, %v270_v22 }
  0xfc   : > { %v275_v24 = vmul.f32 1.442695, %v272_v23 }
  0xfe   : > { %591 = vpow2.f32 %v275_v24 }
 0x107   : > { %v590_v25 = vpop.eup %589 }
 0x108   : > { %277 = vadd.xlane.f32.xlu1 %v590_v25 }
 0x10b   : > { %v592_v26 = vpop.eup %591 }
 0x10c   : > { %279 = vadd.xlane.f32.xlu1 %v592_v26 }
 0x191   : > { %v278_v27 = vpop.xlane.xlu1 %277 }
 0x192   : > { %593 = vrcp.f32 %v278_v27 }
 0x195   : > { %v280_v28 = vpop.xlane.xlu1 %279 }
 0x196   : > { %595 = vrcp.f32 %v280_v28 }
 0x19f   : > { %v594_v29 = vpop.eup %593 }
 0x1a0   : > { %v283_v31 = vmul.f32 %v594_v29, %v590_v25 }
 0x1a3   : > { %v596_v30 = vpop.eup %595 }
 0x1a4   : > { %v284_v32 = vmul.f32 %v596_v30, %v592_v26 }
 0x1a6   : > { %v470_v33 = vpack.c.bf16 %v284_v32, %v283_v31 }
 0x1a8   : > { %471 = vst [vmem:[%s984_s2] sm:$0xff] %v470_v33  }
 0x1a9   : > { %666 = shalt.err (!%p663_p2)
}
 0x1aa   : > { %s667_s30 = scalar_lea.hbm %s993_s3, 128  ;;  %s671_s2 = scalar_lea.hbm %s1083_s21, 1024 }
 0x1ab   : > { %p668_p13 = scmp.ne.s32.totalorder %s993_s3, %s667_s30  ;;  %p672_p7 = scmp.lt.s32.totalorder %s993_s3, %s1083_s21 }
 0x1ac   : > { %p673_p10 = scmp.lt.s32.totalorder %s671_s2, %s667_s30 }
 0x1ad   : > { %p669_p5 = pnand %p668_p13, %p891_p9 }
 0x1ae   : > { %p674_p11 = por %p673_p10, %p672_p7 }
 0x1af   : > { %p670_p0 = pneg %p669_p5 }
 0x1b1   : > { %p675_p8 = pnand %p674_p11, %p670_p0 }
 0x1b3   : > { %678 = shalt.err (!%p675_p8)
}
 0x1b4   : > { %s786_s27 = smov 64   ;;  %s787_s12 = smov 4  }
 0x1b5   : > { %480 = dma.vmem_to_hbm [thread:$0]  (%p891_p9), %s995_s26, 128, %s993_s3, %s296_s15, %s786_s27, %s786_s27, %s787_s12  }
 0x1b6 PF: > { %s1084_s8 = sld [smem:[#allocation12_spill]]  ;;  %p494_p12 = scmp.ge.s32.totalorder %s777_s19, 2 }
 0x1b7   : > { %s1085_s7 = sld [smem:[#allocation15_spill]] }
 0x1bc   : > { %s328_s16 = sand.u32 1, %s1084_s8  }
 0x1bd   : > { %p1086_p3 = scmp.ne.s32.totalorder %s1085_s7, 0  ;;  %s329_s24 = scalar_lea.sflag [#allocation5], %s328_s16 }
 0x1bf   : > { %p490_p1 = pnand %p494_p12, %p1086_p3 }
 0x1c1   : > { %p491_p6 = pneg %p490_p1 }
 0x1c3   : > { %732 = dma.done.wait (%p491_p6), %s329_s24, 128  }
 0x1c4   : > { %734 = vsyncadd (%p491_p6), %s329_s24, 4294967168  ;;  %s21_s19 = sadd.s32 1, %s777_s19   ;;  %s1087_s29 = sld [smem:[#allocation13_spill]] }
 0x1c5   : > { %p18_p4 = scmp.ge.s32.totalorder %s21_s19, 10   ;;  %s1088_s25 = sld [smem:[#allocation14_spill]] }
 0x1c6   : > { %s1089_s9 = smov %s741_s10  ;;  %s1090_s10 = smov %s745_s11 }
 0x1c7   : > { %s1091_s11 = smov %s941_s20  ;;  %s1092_s12 = smov %s753_s13 }
 0x1c8   : > { %s1093_s13 = smov %s757_s14  ;;  %s1094_s14 = smov %s907_s5 }
 0x1c9   : > { %s1095_s15 = smov %s769_s17  ;;  %s1096_s16 = smov %s773_s18 }
 0x1ca   : > { %s1097_s17 = smov %s1087_s29  ;;  %20 = sbr.rel (!%p18_p4) target bundleno = 13 (0xd), region = 90 }
 0x1cb   : > { %s1098_s18 = smov %s1088_s25 }
 0x1cf   :  { %334 = vsyncpa [#allocation4], 1 }
 0x1d0   :  { %336 = vsyncpa [#allocation4 + $0x1], 1 }
 0x1d1   :  { %337 = vsyncpa [#allocation7], 1 }
 0x1d2   :  { %339 = vsyncpa [#allocation7 + $0x1], 1 }
 0x1d3   :  { %340 = vsyncpa [#allocation5], 1 }
 0x1d4   :  { %342 = vsyncpa [#allocation5 + $0x1], 1 }

</bundles_post_ra>
